<compile_context>
chip_gen: v6e
topology: v6e:2x2x1
jax: 0.10.0
libtpu: 0.0.40
codegen_flags: <defaults>
</compile_context>

<pallas_src>
import math
import jax
import jax.numpy as jnp
from jax import lax
from jax.experimental import pallas as pl
from jax.experimental.pallas import tpu as pltpu


# ------------------------------ helpers -------------------------------------
def _softplus(x):
    # Stable softplus: log1p(exp(x)) overflows for large positive x.
    return jnp.maximum(x, 0.0) + jnp.log1p(jnp.exp(-jnp.abs(x)))


def _vmem_capacity_bytes():
    try:
        return int(pltpu.get_tpu_info().vmem_capacity_bytes)
    except Exception:
        return 64 * 1024 * 1024          # conservative fallback (v7x per-TC VMEM)


def _pick_tile_out(out_pad, in_features, batch, budget):
    """Largest 128-multiple OUT tile whose full double-buffered working set
    (bf16 weight streams + f32 eps/out streams + biases + resident bf16 LHS)
    fits `budget`, keeping >= 4 tiles so megacore + pipelining both work."""
    resident = 6 * batch * in_features           # bf16 xz (2B*B*IN) + bf16 [x2|x2z2] (4B*B*IN)
    best = 128                                   # always legal (out_pad % 128 == 0)
    for t in (256, 512, 1024):
        if out_pad % t:
            continue
        if out_pad // t < 4:
            continue
        per_tile = (12 * in_features * t         # bf16 wa + fused wv, double-buffered
                    + 16 * batch * t             # f32 eps + out, double-buffered
                    + 16 * t)                    # f32 biases, double-buffered
        if resident + per_tile <= budget:
            best = t
    return best


# ----------------------------- Pallas kernel --------------------------------
def _bayes_linear_kernel(xz_ref, xv_ref, wa_ref, wv_ref,
                         bmu_ref, bsig2_ref, eps_ref, out_ref):
    # One OUT tile per grid step. Pure matmul + f32 epilogue:
    #   e_b   = (x*z)            @ (wmu*alpha).T                          + bias_mu
    #   var_b = [x^2 | (x*z)^2]  @ [alpha*wsig^2 ; alpha*(1-a)*wmu^2].T   + bias_sigma^2
    dn = (((1,), (0,)), ((), ()))                       # (B,K)x(K,N), no transpose
    e_b = lax.dot_general(xz_ref[...], wa_ref[0], dn,
                          preferred_element_type=jnp.float32) + bmu_ref[...]
    var_b = lax.dot_general(xv_ref[...], wv_ref[0], dn,
                            preferred_element_type=jnp.float32) + bsig2_ref[...]
    var_b = jnp.maximum(var_b, 0.0)                     # guard sqrt against rounding
    out_ref[...] = e_b + jnp.sqrt(var_b) * eps_ref[...]


# ------------------------- derived parameters (glue) -------------------------
def derive_weight_params(params, *, tile_out=None, batch_hint=64):
    """z-independent weight transforms, computed ONCE per step (amortized over
    ensemble members), zero-padded to OUT multiple of 128, K-fused for the
    variance path, pre-transposed/pre-tiled to contiguous (NT, K, TILE) bf16
    slabs for single-DMA weight fetches."""
    alpha = jax.nn.sigmoid(params["lambdal"])                    # (OUT, IN)
    wsig = _softplus(params["weight_rho"])
    bsig = _softplus(params["bias_rho"])
    wmu = params["weight_mu"]
    OUT, IN = wmu.shape

    wa = wmu * alpha                                             # mean path  (OUT, IN)
    wv = jnp.concatenate([alpha * wsig * wsig,                   # fused var  (OUT, 2*IN)
                          alpha * (1.0 - alpha) * wmu * wmu], axis=1)
    bmu = params["bias_mu"].astype(jnp.float32)
    bsig2 = (bsig * bsig).astype(jnp.float32)

    OUT_pad = ((OUT + 127) // 128) * 128
    cap = _vmem_capacity_bytes()
    budget = int(0.4 * cap)                                      # tile-selection budget
    vmem_limit = min(int(0.7 * cap), 112 * 1024 * 1024)
    if tile_out is None:
        tile_out = _pick_tile_out(OUT_pad, IN, batch_hint, budget)
    assert OUT_pad % tile_out == 0

    pad = OUT_pad - OUT
    if pad:
        wa = jnp.pad(wa, ((0, pad), (0, 0)))
        wv = jnp.pad(wv, ((0, pad), (0, 0)))
        bmu = jnp.pad(bmu, (0, pad))
        bsig2 = jnp.pad(bsig2, (0, pad))

    nt = OUT_pad // tile_out
    wa_tiles = jnp.transpose(wa.reshape(nt, tile_out, IN),
                             (0, 2, 1)).astype(jnp.bfloat16)      # (NT, IN,   TILE)
    wv_tiles = jnp.transpose(wv.reshape(nt, tile_out, 2 * IN),
                             (0, 2, 1)).astype(jnp.bfloat16)      # (NT, 2*IN, TILE)

    return dict(
        wa_tiles=wa_tiles, wv_tiles=wv_tiles,
        bias_mu=bmu.reshape(1, OUT_pad), bias_sigma2=bsig2.reshape(1, OUT_pad),
        in_features=IN, out_features=OUT, out_pad=OUT_pad,
        tile_out=tile_out, vmem_limit_bytes=vmem_limit,
    )


# ------------------------------ Pallas wrapper -------------------------------
def bayesian_linear_activations(x, derived, z, eps_act):
    """Training/ensemble branch of BayesianLinear.forward.

    x:       (B, IN)  or stacked ensemble (E, B, IN)
    z:       (IN,)    or per-member       (E, IN)
    eps_act: (B, OUT) or per-member       (E, B, OUT)
    Returns activations of matching leading shape, f32."""
    wa_t, wv_t = derived["wa_tiles"], derived["wv_tiles"]
    bmu, bsig2 = derived["bias_mu"], derived["bias_sigma2"]
    IN, OUT = derived["in_features"], derived["out_features"]
    OUT_pad, TILE = derived["out_pad"], derived["tile_out"]

    ensemble = (x.ndim == 3)
    if not ensemble:
        x, eps_act = x[None], eps_act[None]
        z = jnp.asarray(z).reshape(1, IN)
    E, B, _ = x.shape
    zb = z.reshape(E, 1, IN).astype(jnp.float32)

    # Hoisted LHS transforms (once per call, shared across all OUT tiles).
    xz = x.astype(jnp.float32) * zb                               # (E, B, IN)
    xvar = jnp.concatenate([x.astype(jnp.float32) ** 2, xz * xz], axis=-1)
    xz_b = xz.reshape(E * B, IN).astype(jnp.bfloat16)
    xvar_b = xvar.reshape(E * B, 2 * IN).astype(jnp.bfloat16)
    eps2 = eps_act.reshape(E * B, OUT).astype(jnp.float32)
    if OUT_pad != OUT:
        eps2 = jnp.pad(eps2, ((0, 0), (0, OUT_pad - OUT)))

    EB = E * B
    grid = (OUT_pad // TILE,)

    out = pl.pallas_call(
        _bayes_linear_kernel,
        out_shape=jax.ShapeDtypeStruct((EB, OUT_pad), jnp.float32),
        grid_spec=pltpu.PrefetchScalarGridSpec(
            num_scalar_prefetch=0,
            grid=grid,
            in_specs=[
                pl.BlockSpec((EB, IN), lambda o: (0, 0)),          # xz (resident)
                pl.BlockSpec((EB, 2 * IN), lambda o: (0, 0)),      # [x^2 | (xz)^2] (resident)
                pl.BlockSpec((1, IN, TILE), lambda o: (o, 0, 0)),  # (wmu*alpha).T tile slab
                pl.BlockSpec((1, 2 * IN, TILE), lambda o: (o, 0, 0)),  # fused variance slab
                pl.BlockSpec((1, TILE), lambda o: (0, o)),         # bias_mu
                pl.BlockSpec((1, TILE), lambda o: (0, o)),         # bias_sigma^2
                pl.BlockSpec((EB, TILE), lambda o: (0, o)),        # eps
            ],
            out_specs=pl.BlockSpec((EB, TILE), lambda o: (0, o)),
        ),
        compiler_params=pltpu.CompilerParams(
            dimension_semantics=("parallel",),                     # megacore over OUT tiles
            vmem_limit_bytes=derived["vmem_limit_bytes"],
        ),
    )(xz_b, xvar_b, wa_t, wv_t, bmu, bsig2, eps2)

    out = out[:, :OUT]
    return out.reshape(E, B, OUT) if ensemble else out


# ------------------------------ plain-JAX glue -------------------------------
def sample_z(params, key):
    # q0_std = exp(q0_log_var).sqrt(); z = q0_mean + q0_std * eps
    q0_std = jnp.sqrt(jnp.exp(params["q0_log_var"]))
    eps = jax.random.normal(key, q0_std.shape, dtype=jnp.float32)
    z = params["q0_mean"] + q0_std * eps
    # TODO(synk): PropagateFlow (IAF) is not defined in the reference source;
    # the normalizing flow is treated as identity (log_det = 0).
    return z, jnp.float32(0.0)


def compute_kl(params, key):
    """Side-state self.kl from the training branch (plain JAX glue)."""
    k1, k2 = jax.random.split(key)
    alpha = jax.nn.sigmoid(params["lambdal"])
    wsig = _softplus(params["weight_rho"])
    bsig = _softplus(params["bias_rho"])
    wmu = params["weight_mu"]

    z2, log_det_q = sample_z(params, k1)
    W_mean = z2 * wmu * alpha
    W_var = alpha * (wsig ** 2 + (1.0 - alpha) * (wmu * z2) ** 2)

    log_q0 = jnp.sum(-0.5 * jnp.log(jnp.float32(math.pi))
                     - 0.5 * params["q0_log_var"]
                     - 0.5 * (z2 - params["q0_mean"]) ** 2
                     / jnp.exp(params["q0_log_var"]))
    log_q = -log_det_q + log_q0

    act_mu = params["r0_c"] @ W_mean.T
    act_var = (params["r0_c"] ** 2) @ W_var.T
    act_inner = act_mu + jnp.sqrt(act_var) * jax.random.normal(
        k2, act_var.shape, dtype=jnp.float32)
    act = jnp.clip(act_inner, -1.0, 1.0)            # Hardtanh
    mean_r = jnp.outer(params["r0_b1"], act).mean(-1)
    log_var_r = jnp.outer(params["r0_b2"], act).mean(-1)

    z_b_last, log_det_r = z2, jnp.float32(0.0)      # identity r_flow (see TODO above)
    log_rb = jnp.sum(-0.5 * jnp.log(jnp.float32(math.pi))
                     - 0.5 * log_var_r
                     - 0.5 * (z_b_last - mean_r) ** 2 / jnp.exp(log_var_r))
    log_r = log_det_r + log_rb

    bias_sigma_prior, sigma_prior, alpha_prior = 1.0, 25.0, 0.1
    kl_bias = jnp.sum(jnp.log(bias_sigma_prior / bsig) - 0.5
                      + (bsig ** 2 + params["bias_mu"] ** 2)
                      / (2.0 * bias_sigma_prior ** 2))
    kl_weight = jnp.sum(
        alpha * (jnp.log(sigma_prior / wsig) - 0.5
                 + jnp.log(alpha / alpha_prior)
                 + (wsig ** 2 + (wmu * z2) ** 2) / (2.0 * sigma_prior ** 2))
        + (1.0 - alpha) * jnp.log((1.0 - alpha) / (1.0 - alpha_prior)))
    return kl_bias + kl_weight + log_q - log_r


# -------------------------------- reference ----------------------------------
def _reference_activations(x, params, z_k, eps_act):
    alpha = jax.nn.sigmoid(params["lambdal"])
    wsig = _softplus(params["weight_rho"])
    bsig = _softplus(params["bias_rho"])
    e_w = params["weight_mu"] * alpha * z_k
    var_w = alpha * (wsig ** 2 + (1 - alpha) * (params["weight_mu"] * z_k) ** 2)
    e_b = x @ e_w.T + params["bias_mu"]
    var_b = (x ** 2) @ var_w.T + bsig ** 2
    return e_b + jnp.sqrt(var_b) * eps_act


# ---------------------------------- main -------------------------------------
if __name__ == "__main__":
    # Small but feature-exercising shapes: OUT=200 exercises 128-padding
    # (OUT_pad=256 -> 2 OUT tiles), E=2 ensemble members share the weight stream.
    IN_FEATURES, OUT_FEATURES, BATCH, ENSEMBLE = 256, 200, 8, 2

    key = jax.random.PRNGKey(0)
    ks = jax.random.split(key, 16)
    params = dict(
        weight_mu=jax.random.uniform(ks[0], (OUT_FEATURES, IN_FEATURES),
                                     minval=-0.01, maxval=0.01),
        weight_rho=jax.random.uniform(ks[1], (OUT_FEATURES, IN_FEATURES),
                                      minval=-5.0, maxval=-4.0),
        lambdal=jax.random.uniform(ks[2], (OUT_FEATURES, IN_FEATURES),
                                   minval=0.0, maxval=1.0),
        bias_mu=jax.random.uniform(ks[3], (OUT_FEATURES,),
                                   minval=-0.01, maxval=0.01),
        bias_rho=jax.random.uniform(ks[4], (OUT_FEATURES,),
                                    minval=-5.0, maxval=-4.0),
        q0_mean=0.001 * jax.random.normal(ks[5], (IN_FEATURES,)),
        q0_log_var=-9.0 + 0.001 * jax.random.normal(ks[6], (IN_FEATURES,)),
        r0_c=0.001 * jax.random.normal(ks[7], (IN_FEATURES,)),
        r0_b1=0.001 * jax.random.normal(ks[8], (IN_FEATURES,)),
        r0_b2=0.001 * jax.random.normal(ks[9], (IN_FEATURES,)),
    )
    params = {k: v.astype(jnp.float32) for k, v in params.items()}

    x = jax.random.normal(ks[10], (ENSEMBLE, BATCH, IN_FEATURES), dtype=jnp.float32)

    # forward(): per ensemble member, z_k ~ sample_z(); eps ~ N(0,1) of (B, OUT)
    z_keys = jax.random.split(ks[11], ENSEMBLE)
    z_all = jnp.stack([sample_z(params, z_keys[e])[0] for e in range(ENSEMBLE)])
    eps_act = jax.random.normal(ks[12], (ENSEMBLE, BATCH, OUT_FEATURES),
                                dtype=jnp.float32)

    # Once-per-step parameter transforms (amortized across ensemble members).
    derived = derive_weight_params(params, batch_hint=ENSEMBLE * BATCH)

    activations = bayesian_linear_activations(x, derived, z_all, eps_act)
    kl = compute_kl(params, ks[13])          # side-state self.kl (training)
    jax.block_until_ready((activations, kl))

    ref = jnp.stack([_reference_activations(x[e], params, z_all[e], eps_act[e])
                     for e in range(ENSEMBLE)])
    assert activations.shape == (ENSEMBLE, BATCH, OUT_FEATURES)
    assert bool(jnp.all(jnp.isfinite(activations))) and bool(jnp.isfinite(kl))
    assert bool(jnp.allclose(activations, ref, rtol=5e-2, atol=5e-3)), (
        float(jnp.max(jnp.abs(activations - ref))))

    print("KERNEL_OK")
</pallas_src>

<mosaic_0001>
module attributes {stable_mosaic.version = 11 : i64} {
  func.func @_bayes_linear_kernel(%arg0: i32, %arg1: memref<16x256xbf16, #tpu.memory_space<vmem>>, %arg2: memref<16x512xbf16, #tpu.memory_space<vmem>>, %arg3: memref<1x256x128xbf16, #tpu.memory_space<vmem>>, %arg4: memref<1x512x128xbf16, #tpu.memory_space<vmem>>, %arg5: memref<1x128xf32, #tpu.memory_space<vmem>>, %arg6: memref<1x128xf32, #tpu.memory_space<vmem>>, %arg7: memref<16x128xf32, #tpu.memory_space<vmem>>, %arg8: memref<16x128xf32, #tpu.memory_space<vmem>>) attributes {dimension_semantics = [#tpu.dimension_semantics<parallel>], iteration_bounds = array<i64: 2>, scalar_prefetch = 0 : i64, scratch_operands = 0 : i64, tpu.core_type = #tpu.core_type<tc>, window_params = [{pipeline_mode = #tpu.pipeline_mode<synchronous>, transform_indices = @transform_0, window_bounds = array<i64: 16, 256>}, {pipeline_mode = #tpu.pipeline_mode<synchronous>, transform_indices = @transform_1, window_bounds = array<i64: 16, 512>}, {transform_indices = @transform_2, window_bounds = array<i64: 1, 256, 128>}, {transform_indices = @transform_3, window_bounds = array<i64: 1, 512, 128>}, {transform_indices = @transform_4, window_bounds = array<i64: 1, 128>}, {transform_indices = @transform_5, window_bounds = array<i64: 1, 128>}, {transform_indices = @transform_6, window_bounds = array<i64: 16, 128>}, {transform_indices = @transform_7, window_bounds = array<i64: 16, 128>}]} {
    %c0 = arith.constant 0 : index
    %c0_0 = arith.constant 0 : index
    %0 = vector.load %arg1[%c0, %c0_0] : memref<16x256xbf16, #tpu.memory_space<vmem>>, vector<16x256xbf16>
    %c0_1 = arith.constant 0 : index
    %c0_2 = arith.constant 0 : index
    %c0_3 = arith.constant 0 : index
    %1 = vector.load %arg3[%c0_1, %c0_2, %c0_3] : memref<1x256x128xbf16, #tpu.memory_space<vmem>>, vector<1x256x128xbf16>
    %2 = vector.shape_cast %1 : vector<1x256x128xbf16> to vector<256x128xbf16>
    %cst = arith.constant dense<0.000000e+00> : vector<16x128xf32>
    %3 = tpu.matmul %0, %2, %cst {dimension_numbers = #tpu.dot_dimension_numbers<[1], [0], [0], [1], [0, 0, 1, 1], [], []>} : vector<16x256xbf16>, vector<256x128xbf16>, vector<16x128xf32> -> vector<16x128xf32>
    %c0_4 = arith.constant 0 : index
    %c0_5 = arith.constant 0 : index
    %4 = vector.load %arg5[%c0_4, %c0_5] : memref<1x128xf32, #tpu.memory_space<vmem>>, vector<1x128xf32>
    %5 = vector.broadcast %4 : vector<1x128xf32> to vector<16x128xf32>
    %6 = arith.addf %3, %5 : vector<16x128xf32>
    %c0_6 = arith.constant 0 : index
    %c0_7 = arith.constant 0 : index
    %7 = vector.load %arg2[%c0_6, %c0_7] : memref<16x512xbf16, #tpu.memory_space<vmem>>, vector<16x512xbf16>
    %c0_8 = arith.constant 0 : index
    %c0_9 = arith.constant 0 : index
    %c0_10 = arith.constant 0 : index
    %8 = vector.load %arg4[%c0_8, %c0_9, %c0_10] : memref<1x512x128xbf16, #tpu.memory_space<vmem>>, vector<1x512x128xbf16>
    %9 = vector.shape_cast %8 : vector<1x512x128xbf16> to vector<512x128xbf16>
    %cst_11 = arith.constant dense<0.000000e+00> : vector<16x128xf32>
    %10 = tpu.matmul %7, %9, %cst_11 {dimension_numbers = #tpu.dot_dimension_numbers<[1], [0], [0], [1], [0, 0, 1, 1], [], []>} : vector<16x512xbf16>, vector<512x128xbf16>, vector<16x128xf32> -> vector<16x128xf32>
    %c0_12 = arith.constant 0 : index
    %c0_13 = arith.constant 0 : index
    %11 = vector.load %arg6[%c0_12, %c0_13] : memref<1x128xf32, #tpu.memory_space<vmem>>, vector<1x128xf32>
    %12 = vector.broadcast %11 : vector<1x128xf32> to vector<16x128xf32>
    %13 = arith.addf %10, %12 : vector<16x128xf32>
    %cst_14 = arith.constant 0.000000e+00 : f32
    %14 = vector.broadcast %cst_14 : f32 to vector<16x128xf32>
    %15 = arith.maximumf %13, %14 : vector<16x128xf32>
    %16 = math.sqrt %15 : vector<16x128xf32>
    %c0_15 = arith.constant 0 : index
    %c0_16 = arith.constant 0 : index
    %17 = vector.load %arg7[%c0_15, %c0_16] : memref<16x128xf32, #tpu.memory_space<vmem>>, vector<16x128xf32>
    %18 = arith.mulf %16, %17 : vector<16x128xf32>
    %19 = arith.addf %6, %18 : vector<16x128xf32>
    %c0_17 = arith.constant 0 : index
    %c0_18 = arith.constant 0 : index
    %20 = vector.load %arg8[%c0_17, %c0_18] : memref<16x128xf32, #tpu.memory_space<vmem>>, vector<16x128xf32>
    tpu.vector_store %arg8[%c0_17, %c0_18], %19 {strides = array<i32>} : memref<16x128xf32, #tpu.memory_space<vmem>>, vector<16x128xf32>,
    return
  }
  func.func @transform_0(%arg0: i32) -> (i32, i32) {
    %c0_i32 = arith.constant 0 : i32
    %c0_i32_0 = arith.constant 0 : i32
    %c0_i32_1 = arith.constant 0 : i32
    return %c0_i32, %c0_i32_0 : i32, i32
  }
  func.func @transform_1(%arg0: i32) -> (i32, i32) {
    %c0_i32 = arith.constant 0 : i32
    %c0_i32_0 = arith.constant 0 : i32
    %c0_i32_1 = arith.constant 0 : i32
    return %c0_i32, %c0_i32_0 : i32, i32
  }
  func.func @transform_2(%arg0: i32) -> (i32, i32, i32) {
    %c0_i32 = arith.constant 0 : i32
    %c0_i32_0 = arith.constant 0 : i32
    %c0_i32_1 = arith.constant 0 : i32
    return %arg0, %c0_i32, %c0_i32_0 : i32, i32, i32
  }
  func.func @transform_3(%arg0: i32) -> (i32, i32, i32) {
    %c0_i32 = arith.constant 0 : i32
    %c0_i32_0 = arith.constant 0 : i32
    %c0_i32_1 = arith.constant 0 : i32
    return %arg0, %c0_i32, %c0_i32_0 : i32, i32, i32
  }
  func.func @transform_4(%arg0: i32) -> (i32, i32) {
    %c0_i32 = arith.constant 0 : i32
    %c0_i32_0 = arith.constant 0 : i32
    return %c0_i32, %arg0 : i32, i32
  }
  func.func @transform_5(%arg0: i32) -> (i32, i32) {
    %c0_i32 = arith.constant 0 : i32
    %c0_i32_0 = arith.constant 0 : i32
    return %c0_i32, %arg0 : i32, i32
  }
  func.func @transform_6(%arg0: i32) -> (i32, i32) {
    %c0_i32 = arith.constant 0 : i32
    %c0_i32_0 = arith.constant 0 : i32
    return %c0_i32, %arg0 : i32, i32
  }
  func.func @transform_7(%arg0: i32) -> (i32, i32) {
    %c0_i32 = arith.constant 0 : i32
    %c0_i32_0 = arith.constant 0 : i32
    return %c0_i32, %arg0 : i32, i32
  }
}

</mosaic_0001>

<bundles_post_ra>
// kernel: tpu_custom_call.1
= control target key start
LH: loop header
LB: loop body
LE: loop exit
PB: predicated region body
PF: predicated region fallthrough
CT: control target
= control target key end

     0   :  { %s2066_s0 = inlined_call_operand.hbm [shape: bf16[16,256], index: 0, kind: input, shape index: {}]   ;;  %s2067_s1 = inlined_call_operand.hbm [shape: bf16[16,512], index: 1, kind: input, shape index: {}]   ;;  %s2068_s2 = inlined_call_operand.hbm [shape: bf16[2,256,128], index: 2, kind: input, shape index: {}]   ;;  %s2069_s3 = inlined_call_operand.hbm [shape: bf16[2,512,128], index: 3, kind: input, shape index: {}]   ;;  %s2070_s4 = inlined_call_operand.vmem [shape: f32[1,256], index: 4, kind: input, shape index: {}]   ;;  %s2071_s5 = inlined_call_operand.vmem [shape: f32[1,256], index: 5, kind: input, shape index: {}]   ;;  %s2072_s6 = inlined_call_operand.hbm [shape: f32[16,256], index: 6, kind: input, shape index: {}]   ;;  %s2073_s7 = inlined_call_operand.hbm [shape: f32[16,256], index: 7, kind: output, shape index: {}]  }
   0x1   :  { %2088 = sst [smem:[#allocation19_spill]] %s2066_s0 }
   0x2   :  { %2089 = sst [smem:[#allocation20_spill]] %s2068_s2 }
   0x3   :  { %12 = vsyncpa [#allocation3], 0 }
   0x4   :  { %13 = vsyncpa [#allocation6], 0 }
   0x5   :  { %14 = vsyncpa [#allocation4], 0 }
   0x6   :  { %16 = vsyncpa [#allocation4 + $0x1], 0  ;;  %s1730_s24 = smov 0   ;;  %s1732_s25 = smov 0  }
   0x7   :  { %s1734_s26 = smov 0   ;;  %s1736_s27 = smov 0  }
   0x8 LB: > { %2090 = sst [smem:[#allocation15_spill]] %s1669_s26  ;;  %s1751_s28 = sadd.s32 4294967295, %s1673_s27   ;;  %s1673_s27 = sphi %s1736_s27, %s2120_s27   ;;  %s1669_s26 = sphi %s1734_s26, %s2122_s26   ;;  %s1665_s25 = sphi %s1732_s25, %s2124_s25   ;;  %s1661_s24 = sphi %s1730_s24, %s2123_s24  }
   0x9   : > { %s1170_s29 = sadd.s32 4294967294, %s1673_s27   ;;  %s1755_s30 = sadd.s32 1, %s1673_s27  }
   0xa   : > { %2091 = sst [smem:[#allocation16_spill]] %s1755_s30  ;;  %s71_s8 = sadd.s32 1, %s1669_s26 }
   0xb   : > { %s68_s9 = ssub.s32 %s1673_s27, %s1755_s30  ;;  %p78_p0 = scmp.ne.s32.totalorder %s1669_s26, %s1665_s25 }
   0xc   : > { %p69_p1 = scmp.eq.s32.totalorder %s68_s9, 0  ;;  %p79_p2 = scmp.eq.s32.totalorder %s1673_s27, 0 }
   0xd   : > { %p84_p3 = scmp.ne.s32.totalorder %s1665_s25, %s1661_s24  ;;  %p2081_p4 = scmp.eq.s32.totalorder %s1751_s28, 0 }
   0xe   : > { %s1767_s10 = scalar_select %p69_p1, %s1669_s26, %s71_s8  }
   0xf   : > { %p1769_p5 = por %p79_p2, %p78_p0  ;;  %p1775_p6 = por %p2081_p4, %p84_p3 }
  0x10   : > { %2092 = sst [smem:[#allocation17_spill]] %s1767_s10  ;;  %p212_p7 = scmp.eq.s32.totalorder %s1751_s28, 1 }
  0x11   : > { %s2094_s12 = scalar_select %p1775_p6, 1, 0 }
  0x12   : > { %p218_p8 = scmp.eq.s32.totalorder %s1170_s29, 1  ;;  %p1171_p9 = scmp.ge.s32.totalorder %s1673_s27, 1 }
  0x13   : > { %p225_p10 = scmp.lt.s32.totalorder %s1673_s27, 3  ;;  %p1782_p11 = por %p212_p7, %p78_p0 }
  0x14   : > { %p1786_p12 = por %p218_p8, %p84_p3  ;;  %s1675_s16 = smov [#allocation2]  }
  0x15   : > { %s2095_s13 = scalar_select %p1782_p11, 1, 0 }
  0x16   : > { %s2096_s14 = scalar_select %p1786_p12, 1, 0 }
  0x17   : > { %p1790_p13 = pnand %p1171_p9, %p225_p10  ;;  %s237_s17 = sshll.u32 %s1675_s16, 4  ;;  %s238_s17 = int_to_ptr.vmem [resolvable:$true] %s237_s17 }
  0x18   : > { %2097 = sst [smem:[#allocation18_spill]] %s2096_s14  ;;  %p1357_p3 = scmp.lt.s32.totalorder %s1673_s27, 2 }
  0x19   : > { %s2098_s15 = scalar_select %p1790_p13, 1, 0 }
  0x1a   : > { %p1334_p1 = pneg %p1790_p13  ;;  %s264_s19 = sand.u32 1, %s1673_s27  }
  0x1b   : > { %s1476_s20 = scalar_lea.vmem %s238_s17, 256  ;;  %p1484_p12 = scmp.lt.s32.totalorder %s238_s17, %s238_s17 }
  0x1c   : > { %p1798_p2 = pnand %p1334_p1, %p2081_p4  ;;  %p1477_p8 = scmp.ne.s32.totalorder %s238_s17, %s1476_s20 }
  0x1d   : > { %p1485_p11 = scmp.lt.s32.totalorder %s1476_s20, %s1476_s20 }
  0x1e   : > { %s2099_s18 = scalar_select %p1798_p2, 1, 0 }
  0x1f   : > { %p2082_p7 = pneg %p1798_p2  ;;  %p1486_p6 = por %p1485_p11, %p1484_p12 }
  0x21   : > { %p1479_p9 = pnand %p1477_p8, %p2082_p7 }
  0x23   : > { %p1480_p10 = pneg %p1479_p9 }
  0x25   : > { %p1487_p1 = pnand %p1486_p6, %p1480_p10 }
  0x27   : > { %1490 = shalt.err (!%p1487_p1)
}
  0x28   : > { %s2079_s21 = smov 128   ;;  %s2080_s22 = smov 8  }
  0x29   : > { %s2100_s0 = sld [smem:[#allocation19_spill]]  ;;  %p1822_p11 = pnand %p1357_p3, %p1769_p5 }
  0x2a   : > { %s1827_s9 = sand.u32 1, %s1669_s26   ;;  %s1250_s20 = sshll.u32 %s1673_s27, 11 }
  0x2b   : > { %s1175_s16 = sshll.u32 %s1827_s9, 7  ;;  %s2102_s2 = sld [smem:[#allocation20_spill]] }
  0x2c   : > { %s268_s11 = scalar_lea.vmem [#allocation7], %s1175_s16  ;;  %s1839_s29 = scalar_lea.sflag [#allocation3], %s264_s19 }
  0x2d   : > { %p1845_p6 = pneg %p1822_p11 }
  0x2f   : > { %1337 = dma.hbm_to_vmem [thread:$0]  (!%p1798_p2), %s2100_s0, 256, %s238_s17, [#allocation3], %s2079_s21, %s2079_s21, %s2080_s22  }
  0x30   : > { %s275_s17 = sshll.u32 %s268_s11, 4  ;;  %s1836_s17 = int_to_ptr.vmem [resolvable:$true] %s275_s17 }
  0x31   : > { %s1834_s14 = scalar_lea.hbm %s2102_s2, %s1250_s20  ;;  %s1496_s16 = scalar_lea.hbm %s2102_s2, 4096 }
  0x32   : > { %s1491_s21 = scalar_lea.hbm %s1834_s14, 2048  ;;  %p1497_p8 = scmp.lt.s32.totalorder %s1834_s14, %s2102_s2 }
  0x33   : > { %p1492_p5 = scmp.ne.s32.totalorder %s1834_s14, %s1491_s21  ;;  %p1498_p9 = scmp.lt.s32.totalorder %s1496_s16, %s1491_s21 }
  0x35   : > { %p1494_p12 = pnand %p1845_p6, %p1492_p5  ;;  %p1499_p10 = por %p1498_p9, %p1497_p8 }
  0x37   : > { %p1495_p3 = pneg %p1494_p12 }
  0x39   : > { %p1500_p1 = pnand %p1499_p10, %p1495_p3 }
  0x3b   : > { %1503 = shalt.err (!%p1500_p1)
}
  0x3c   : > { %s1504_s19 = scalar_lea.vmem %s1836_s17, 2048  ;;  %s1678_s23 = smov [#allocation7]  }
  0x3d   : > { %p1505_p0 = scmp.ne.s32.totalorder %s1836_s17, %s1504_s19  ;;  %s1509_s30 = sshll.u32 %s1678_s23, 4  ;;  %s1510_s30 = int_to_ptr.vmem [resolvable:$false] %s1509_s30 }
  0x3e   : > { %s1511_s10 = scalar_lea.vmem %s1510_s30, 4096  ;;  %p1512_p4 = scmp.lt.s32.totalorder %s1836_s17, %s1510_s30 }
  0x3f   : > { %p1507_p5 = pnand %p1505_p0, %p1845_p6  ;;  %p1513_p7 = scmp.lt.s32.totalorder %s1511_s10, %s1504_s19 }
  0x41   : > { %p1508_p12 = pneg %p1507_p5  ;;  %p1514_p13 = por %p1513_p7, %p1512_p4 }
  0x43   : > { %p1515_p2 = pnand %p1514_p13, %p1508_p12 }
  0x45   : > { %1518 = shalt.err (!%p1515_p2)
}
  0x46   : > { %s2087_s21 = smov 64   ;;  %s1680_s16 = smov 4  }
  0x47   : > { %1344 = dma.hbm_to_vmem [thread:$0]  (!%p1822_p11), %s1834_s14, 2048, %s1836_s17, %s1839_s29, %s2087_s21, %s2087_s21, %s1680_s16  }
  0x48   : > { %s1251_s23 = sshll.u32 %s1673_s27, 12  ;;  %s2104_s30 = sshll.u32 %s1827_s9, 8 }
  0x49   : > { %s1875_s19 = scalar_lea.hbm %s2069_s3, %s1251_s23  ;;  %s289_s10 = scalar_lea.vmem [#allocation8], %s2104_s30 }
  0x4a   : > { %s296_s0 = sshll.u32 %s289_s10, 4  ;;  %s1519_s2 = scalar_lea.hbm %s1875_s19, 4096  ;;  %s297_s0 = int_to_ptr.vmem [resolvable:$true] %s296_s0 }
  0x4b   : > { %p1520_p4 = scmp.ne.s32.totalorder %s1875_s19, %s1519_s2  ;;  %s1524_s17 = scalar_lea.hbm %s2069_s3, 8192 }
  0x4c   : > { %p1525_p0 = scmp.lt.s32.totalorder %s1875_s19, %s2069_s3  ;;  %p1526_p7 = scmp.lt.s32.totalorder %s1524_s17, %s1519_s2 }
  0x4d   : > { %p1522_p13 = pnand %p1520_p4, %p1845_p6 }
  0x4e   : > { %p1527_p3 = por %p1526_p7, %p1525_p0 }
  0x4f   : > { %p1523_p2 = pneg %p1522_p13 }
  0x51   : > { %p1528_p8 = pnand %p1527_p3, %p1523_p2 }
  0x53   : > { %1531 = shalt.err (!%p1528_p8)
}
  0x54   : > { %s1532_s23 = scalar_lea.vmem %s297_s0, 4096  ;;  %s1681_s11 = smov [#allocation8]  }
  0x55   : > { %p1533_p9 = scmp.ne.s32.totalorder %s297_s0, %s1532_s23  ;;  %s1537_s30 = sshll.u32 %s1681_s11, 4  ;;  %s1538_s30 = int_to_ptr.vmem [resolvable:$false] %s1537_s30 }
  0x56   : > { %s1539_s10 = scalar_lea.vmem %s1538_s30, 8192  ;;  %p1540_p5 = scmp.lt.s32.totalorder %s297_s0, %s1538_s30 }
  0x57   : > { %p1535_p10 = pnand %p1533_p9, %p1845_p6  ;;  %p1541_p12 = scmp.lt.s32.totalorder %s1539_s10, %s1532_s23 }
  0x59   : > { %p1536_p1 = pneg %p1535_p10  ;;  %p1542_p4 = por %p1541_p12, %p1540_p5 }
  0x5b   : > { %p1543_p13 = pnand %p1542_p4, %p1536_p1 }
  0x5d   : > { %1546 = shalt.err (!%p1543_p13)
}
  0x5e   : > { %s2105_s2 = smov 64   ;;  %s1682_s26 = smov [#allocation5]  }
  0x5f   : > { %1347 = dma.hbm_to_vmem [thread:$0]  (!%p1822_p11), %s1875_s19, 4096, %s297_s0, %s1839_s29, %s2105_s2, %s2105_s2, %s1680_s16  }
  0x60   : > { %s250_s21 = sshll.u32 %s1682_s26, 4  ;;  %p2106_p0 = scmp.ne.s32.totalorder %s2099_s18, 0  ;;  %s251_s21 = int_to_ptr.vmem [resolvable:$true] %s250_s21 }
  0x61   : > { %s1558_s14 = scalar_lea.vmem %s251_s21, 512  ;;  %p1566_p9 = scmp.lt.s32.totalorder %s251_s21, %s251_s21 }
  0x62   : > { %p1559_p2 = scmp.ne.s32.totalorder %s251_s21, %s1558_s14  ;;  %p2107_p7 = pneg %p2106_p0 }
  0x63   : > { %p1567_p10 = scmp.lt.s32.totalorder %s1558_s14, %s1558_s14 }
  0x64   : > { %p1561_p3 = pnand %p1559_p2, %p2107_p7 }
  0x65   : > { %p1568_p1 = por %p1567_p10, %p1566_p9 }
  0x66   : > { %p1562_p8 = pneg %p1561_p3 }
  0x68   : > { %p1569_p5 = pnand %p1568_p1, %p1562_p8 }
  0x6a   : > { %1572 = shalt.err (!%p1569_p5)
}
  0x6b   : > { %s1683_s17 = smov 256   ;;  %s1684_s0 = smov 16  }
  0x6c   : > { %1340 = dma.hbm_to_vmem [thread:$0]  (!%p2106_p0), %s2067_s1, 512, %s251_s21, [#allocation6], %s1683_s17, %s1683_s17, %s1684_s0  }
  0x6d   : > { %s1181_s20 = sshll.u32 %s1827_s9, 4  ;;  %s1182_s23 = sshll.u32 %s1673_s27, 7 }
  0x6e   : > { %s1914_s10 = scalar_lea.hbm %s2072_s6, %s1182_s23  ;;  %s322_s2 = scalar_lea.vmem [#allocation9], %s1181_s20 }
  0x6f   : > { %s328_s26 = sshll.u32 %s322_s2, 4  ;;  %s1573_s18 = scalar_lea.hbm %s1914_s10, 256  ;;  %s329_s26 = int_to_ptr.vmem [resolvable:$true] %s328_s26 }
  0x70   : > { %p1574_p12 = scmp.ne.s32.totalorder %s1914_s10, %s1573_s18  ;;  %s1578_s9 = scalar_lea.hbm %s2072_s6, 512 }
  0x71   : > { %p1579_p2 = scmp.lt.s32.totalorder %s1914_s10, %s2072_s6  ;;  %p1580_p0 = scmp.lt.s32.totalorder %s1578_s9, %s1573_s18 }
  0x72   : > { %p1576_p4 = pnand %p1574_p12, %p1845_p6 }
  0x73   : > { %p1581_p7 = por %p1580_p0, %p1579_p2 }
  0x74   : > { %p1577_p13 = pneg %p1576_p4 }
  0x76   : > { %p1582_p3 = pnand %p1581_p7, %p1577_p13 }
  0x78   : > { %1585 = shalt.err (!%p1582_p3)
}
  0x79   : > { %s1586_s19 = scalar_lea.vmem %s329_s26, 256  ;;  %s1685_s20 = smov [#allocation9]  }
  0x7a   : > { %p1587_p8 = scmp.ne.s32.totalorder %s329_s26, %s1586_s19  ;;  %s1591_s23 = sshll.u32 %s1685_s20, 4  ;;  %s1592_s23 = int_to_ptr.vmem [resolvable:$false] %s1591_s23 }
  0x7b   : > { %s1593_s11 = scalar_lea.vmem %s1592_s23, 512  ;;  %p1594_p1 = scmp.lt.s32.totalorder %s329_s26, %s1592_s23 }
  0x7c   : > { %p1589_p9 = pnand %p1587_p8, %p1845_p6  ;;  %p1595_p5 = scmp.lt.s32.totalorder %s1593_s11, %s1586_s19 }
  0x7e   : > { %p1590_p10 = pneg %p1589_p9  ;;  %p1596_p12 = por %p1595_p5, %p1594_p1 }
  0x80   : > { %p1597_p4 = pnand %p1596_p12, %p1590_p10 }
  0x82   : > { %1600 = shalt.err (!%p1597_p4)
}
  0x83   : > { %s2108_s30 = smov 8   ;;  %s2109_s2 = smov 128  }
  0x84   : > { %1350 = dma.hbm_to_vmem [thread:$0]  (!%p1822_p11), %s1914_s10, 256, %s329_s26, %s1839_s29, %s1683_s17, %s2109_s2, %s2108_s30  }
  0x85   : > { %p2110_p6 = scmp.ne.s32.totalorder %s2098_s15, 0 }
  0x86   : > { %p2111_p13 = scmp.eq.s32.totalorder (!%p2110_p6), %s1751_s28, 0 }
  0x87   : > { %340 = sbr.rel (%p2110_p6) target bundleno = 457 (0x1c9), region = 48 }
  0x8c   : > { %1644 = dma.done.wait (%p2111_p13), [#allocation3], 256   ;;  %p2112_p2 = pmov %p2111_p13 }
  0x8e   : > { %1646 = vsyncadd (%p2112_p2), [#allocation3], 4294967040  ;;  %p2113_p0 = pmov %p2112_p2 }
  0x90   : > { %1648 = dma.done.wait (%p2113_p0), [#allocation6], 512   ;;  %p2114_p7 = pmov %p2113_p0 }
  0x91   : > { %s350_s22 = sand.u32 1, %s1751_s28   ;;  %s1948_s8 = sand.u32 1, %s1665_s25  }
  0x92   : > { %1650 = vsyncadd (%p2114_p7), [#allocation6], 4294966784  ;;  %s1186_s15 = sshll.u32 %s1948_s8, 7  ;;  %s351_s29 = scalar_lea.sflag [#allocation3], %s350_s22 }
  0x93   : > { %s1951_s17 = scalar_lea.vmem [#allocation7], %s1186_s15  ;;  %p2115_p11 = scmp.ne.s32.totalorder %s2094_s12, 0 }
  0x95   : > { %1652 = dma.done.wait (%p2115_p11), %s351_s29, 6400  }
  0x96   : > { %1654 = vsyncadd (%p2115_p11), %s351_s29, 4294960896  ;;  %v1404_v0 = vld [vmem:[%s1951_s17 + $0x78] sm:$0xff]   ;;  %v1406_v2 = vld [vmem:[%s1951_s17 + $0x70] sm:$0xff]   ;;  %s1187_s12 = sshll.u32 %s1948_s8, 8  ;;  %p419_p3 = scmp.lt.s32.totalorder %s1751_s28, 1 }
  0x97   : > { %v1405_v1 = vld [vmem:[%s1951_s17 + $0x38] sm:$0xff]   ;;  %1252 = vmatprep.subr.bf16.mxu0 %v1404_v0  ;;  %v1407_v3 = vld [vmem:[%s1951_s17 + $0x30] sm:$0xff]   ;;  %v1408_v4 = vld [vmem:[%s1951_s17 + $0x68] sm:$0xff]   ;;  %s1967_s10 = scalar_lea.vmem [#allocation8], %s1187_s12  ;;  %s1188_s9 = sshll.u32 %s1948_s8, 4 }
  0x98   : > { %1253 = vmatpush3.bf16.msra.mxu0 %v1405_v1  ;;  %v1409_v5 = vld [vmem:[%s1951_s17 + $0x28] sm:$0xff]   ;;  %v1410_v6 = vld [vmem:[%s1951_s17 + $0x60] sm:$0xff]   ;;  %v1412_v8 = vld [vmem:[%s1951_s17 + $0x58] sm:$0xff]   ;;  %s420_s26 = scalar_select %p419_p3, %s1751_s28, 1 }
  0x99   : > { %1254 = vmatprep.subr.bf16.mxu0 %v1406_v2  ;;  %v1411_v7 = vld [vmem:[%s1951_s17 + $0x20] sm:$0xff]   ;;  %v1417_v9 = vld [vmem:[%s1967_s10 + $0x78] sm:$0xff]   ;;  %v1414_v12 = vld [vmem:[%s1951_s17 + $0x50] sm:$0xff]   ;;  %s372_s20 = scalar_lea.vmem [#allocation9], %s1188_s9  ;;  %s1247_s23 = sshll.u32 %s1751_s28, 7 }
  0x9a   : > { %v1413_v10 = vld [vmem:[%s1951_s17 + $0x18] sm:$0xff]   ;;  %1274 = vmatprep.subr.bf16.mxu1 %v1417_v9  ;;  %v1421_v13 = vld [vmem:[%s1967_s10 + $0x70] sm:$0xff]   ;;  %v1416_v16 = vld [vmem:[%s1951_s17 + $0x48] sm:$0xff]   ;;  %s424_s21 = scalar_lea.vmem %s2071_s5, %s420_s26  ;;  %s421_s19 = scalar_lea.vmem %s2070_s4, %s420_s26 }
  0x9b   : > { %v1419_v11 = vld [vmem:[%s1967_s10 + $0x38] sm:$0xff]   ;;  %v1415_v14 = vld [vmem:[%s1951_s17 + $0x10] sm:$0xff]   ;;  %v1418_v17 = vld [vmem:[%s1951_s17 + $0x8] sm:$0xff]   ;;  %s418_s11 = scalar_lea.vmem [#allocation10], %s1188_s9  ;;  %s2021_s15 = scalar_lea.hbm %s2073_s7, %s1247_s23 }
  0x9c   : > { %1255 = vmatpush3.bf16.msra.mxu0 %v1407_v3  ;;  %1275 = vmatpush3.bf16.msra.mxu1 %v1419_v11  ;;  %v1423_v15 = vld [vmem:[%s1967_s10 + $0x30] sm:$0xff]   ;;  %v1427_v19 = vld [vmem:[%s1967_s10 + $0x68] sm:$0xff]   ;;  %v1420_v20 = vld [vmem:[%s1951_s17 + $0x40] sm:$0xff]   ;;  %s1020_s30 = sshll.u32 %s418_s11, 4  ;;  %s1008_s28 = scalar_lea.sflag [#allocation4], %s1948_s8  ;;  %s2023_s30 = int_to_ptr.vmem [resolvable:$true] %s1020_s30 }
  0x9d   : > { %1256 = vmatprep.subr.bf16.mxu0 %v1408_v4  ;;  %1276 = vmatprep.subr.bf16.mxu1 %v1421_v13  ;;  %v1426_v18 = vld [vmem:[#allocation2 + $0x4] ss:$8 sps:$4 sm:$0xff]   ;;  %v1429_v21 = vld [vmem:[%s1967_s10 + $0x28] sm:$0xff]   ;;  %v1422_v22 = vld [vmem:[%s1951_s17] sm:$0xff]   ;;  %s1601_s29 = scalar_lea.vmem %s2023_s30, 256  ;;  %p2116_p9 = scmp.ne.s32.totalorder %s2095_s13, 0 }
  0x9e   : > { %605 = vmatprep.mubr.bf16.mxu0 %v1426_v18  ;;  %v1431_v23 = vld [vmem:[%s1967_s10 + $0x60] sm:$0xff]   ;;  %v1428_v24 = vld [vmem:[%s1967_s10 + $0xf8] sm:$0xff]   ;;  %v1432_v29 = vld [vmem:[%s1967_s10 + $0xf0] sm:$0xff]   ;;  %p1602_p8 = scmp.ne.s32.totalorder %s2023_s30, %s1601_s29  ;;  %s1686_s17 = smov [#allocation10]  }
  0x9f   : > { %v1424_v25 = vld [vmem:[#allocation2] ss:$8 sps:$4 sm:$0xff]   ;;  %v1433_v26 = vld [vmem:[%s1967_s10 + $0x20] sm:$0xff]   ;;  %v1436_v33 = vld [vmem:[%s1967_s10 + $0xe8] sm:$0xff]   ;;  %s1605_s12 = sshll.u32 %s1686_s17, 4  ;;  %s1606_s12 = int_to_ptr.vmem [resolvable:$false] %s1605_s12 }
  0xa0   : > { %1257 = vmatpush3.bf16.msra.mxu0 %v1409_v5  ;;  %1277 = vmatpush3.bf16.msra.mxu1 %v1423_v15  ;;  %v1430_v27 = vld [vmem:[%s1967_s10 + $0xb8] sm:$0xff]   ;;  %v1434_v31 = vld [vmem:[%s1967_s10 + $0xb0] sm:$0xff]   ;;  %v1438_v35 = vld [vmem:[%s1967_s10 + $0xa8] sm:$0xff]   ;;  %p1603_p10 = pnand %p1602_p8, %p2116_p9  ;;  %p1608_p5 = scmp.lt.s32.totalorder %s2023_s30, %s1606_s12 }
  0xa1   : > { %1258 = vmatprep.subr.bf16.mxu0 %v1410_v6  ;;  %1278 = vmatprep.subr.bf16.mxu1 %v1427_v19  ;;  %v1435_v28 = vld [vmem:[%s1967_s10 + $0x58] sm:$0xff]   ;;  %v1439_v32 = vld [vmem:[%s1967_s10 + $0x50] sm:$0xff]   ;;  %v1443_v36 = vld [vmem:[%s1967_s10 + $0x48] sm:$0xff]  }
  0xa2   : > { %v1437_v30 = vld [vmem:[%s1967_s10 + $0x18] sm:$0xff]   ;;  %v1441_v34 = vld [vmem:[%s1967_s10 + $0x10] sm:$0xff]   ;;  %v1440_v37 = vld [vmem:[%s1967_s10 + $0xe0] sm:$0xff]   ;;  %p1604_p1 = pneg %p1603_p10 }
  0xa3   : > { %v1445_v38 = vld [vmem:[%s1967_s10 + $0x8] sm:$0xff]   ;;  %v1442_v39 = vld [vmem:[%s1967_s10 + $0xa0] sm:$0xff]   ;;  %v1444_v41 = vld [vmem:[%s1967_s10 + $0xd8] sm:$0xff]  }
  0xa4   : > { %1259 = vmatpush3.bf16.msra.mxu0 %v1411_v7  ;;  %1279 = vmatpush3.bf16.msra.mxu1 %v1429_v21  ;;  %v1447_v40 = vld [vmem:[%s1967_s10 + $0x40] sm:$0xff]   ;;  %v1446_v45 = vld [vmem:[%s1967_s10 + $0x98] sm:$0xff]   ;;  %v1448_v46 = vld [vmem:[%s1967_s10 + $0xd0] sm:$0xff]  }
  0xa5   : > { %1260 = vmatprep.subr.bf16.mxu0 %v1412_v8  ;;  %1280 = vmatprep.subr.bf16.mxu1 %v1431_v23  ;;  %v1449_v42 = vld [vmem:[%s1967_s10] sm:$0xff]   ;;  %v1450_v47 = vld [vmem:[%s1967_s10 + $0x90] sm:$0xff]   ;;  %v1460_v48 = vld [vmem:[#allocation5 + $0xc] ss:$16 sps:$4 sm:$0xff]  }
  0xa6   : > { %v1451_v43 = vld [vmem:[#allocation5] ss:$16 sps:$4 sm:$0xff]   ;;  %v1453_v44 = vld [vmem:[#allocation5 + $0x4] ss:$16 sps:$4 sm:$0xff]   ;;  %v1454_v49 = vld [vmem:[%s1967_s10 + $0xc8] sm:$0xff]  }
  0xa7   : > { %933 = vmatprep.mubr.bf16.mxu1 %v1453_v44  ;;  %v1455_v50 = vld [vmem:[%s1967_s10 + $0x88] sm:$0xff]   ;;  %v1456_v51 = vld [vmem:[%s1967_s10 + $0xc0] sm:$0xff]   ;;  %v1209_v62 = vld [vmem:[%s424_s21] ss:$0 sm:$0xff] }
  0xa8   : > { %1261 = vmatpush3.bf16.msra.mxu0 %v1413_v10  ;;  %1281 = vmatpush3.bf16.msra.mxu1 %v1433_v26  ;;  %v1457_v52 = vld [vmem:[%s1967_s10 + $0x80] sm:$0xff]   ;;  %v1458_v53 = vld [vmem:[#allocation5 + $0x8] ss:$16 sps:$4 sm:$0xff]   ;;  %s1607_s10 = scalar_lea.vmem %s1606_s12, 512 }
  0xa9   : > { %1262 = vmatprep.subr.bf16.mxu0 %v1414_v12  ;;  %1282 = vmatprep.subr.bf16.mxu1 %v1435_v28  ;;  %v999_v18 = vld [vmem:[%s372_s20] sm:$0xff]  ;;  %p1609_p12 = scmp.lt.s32.totalorder %s1607_s10, %s1601_s29 }
  0xab   : > { %p1610_p4 = por %p1609_p12, %p1608_p5 }
  0xac   : > { %1263 = vmatpush3.bf16.msra.mxu0 %v1415_v14  ;;  %1283 = vmatpush3.bf16.msra.mxu1 %v1437_v30 }
  0xad   : > { %1264 = vmatprep.subr.bf16.mxu0 %v1416_v16  ;;  %1284 = vmatprep.subr.bf16.mxu1 %v1439_v32  ;;  %v1190_v16 = vld [vmem:[%s421_s19] ss:$0 sm:$0xff]  ;;  %p1611_p6 = pnand %p1610_p4, %p1604_p1 }
  0xb0   : > { %1265 = vmatpush3.bf16.msra.mxu0 %v1418_v17  ;;  %1285 = vmatpush3.bf16.msra.mxu1 %v1441_v34 }
  0xb1   : > { %1266 = vmatprep.subr.bf16.mxu0 %v1420_v20  ;;  %1286 = vmatprep.subr.bf16.mxu1 %v1443_v36 }
  0xb4   : > { %1267 = vmatpush3.bf16.msra.mxu0 %v1422_v22  ;;  %1287 = vmatpush3.bf16.msra.mxu1 %v1445_v38 }
  0xb5   : > { %1296 = vmatprep.subr.bf16.mxu0 %v1428_v24  ;;  %1288 = vmatprep.subr.bf16.mxu1 %v1447_v40 }
  0xb7   : > { %606 = vmatmul.mubr.bf16.vlgmr.msra.gmra.mxu0 %v1424_v25 }
  0xb8   : > { %1297 = vmatpush3.bf16.msra.mxu0 %v1430_v27  ;;  %1289 = vmatpush3.bf16.msra.mxu1 %v1449_v42  ;;  %v1000_v27 = vld [vmem:[%s372_s20 + $0x8] sm:$0xff] }
  0xb9   : > { %1298 = vmatprep.subr.bf16.mxu0 %v1432_v29  ;;  %974 = vmatprep.mubr.bf16.mxu0 %v1460_v48 }
  0xbb   : > { %934 = vmatmul.mubr.bf16.vlgmr.msra.gmra.mxu1 %v1451_v43 }
  0xbc   : > { %1299 = vmatpush3.bf16.msra.mxu0 %v1434_v31 }
  0xbd   : > { %1300 = vmatprep.subr.bf16.mxu0 %v1436_v33 }
  0xc0   : > { %1301 = vmatpush3.bf16.msra.mxu0 %v1438_v35 }
  0xc1   : > { %1302 = vmatprep.subr.bf16.mxu0 %v1440_v37 }
  0xc4   : > { %1303 = vmatpush3.bf16.msra.mxu0 %v1442_v39 }
  0xc5   : > { %1304 = vmatprep.subr.bf16.mxu0 %v1444_v41 }
  0xc8   : > { %1305 = vmatpush3.bf16.msra.mxu0 %v1446_v45 }
  0xc9   : > { %1306 = vmatprep.subr.bf16.mxu0 %v1448_v46 }
  0xcc   : > { %1307 = vmatpush3.bf16.msra.mxu0 %v1450_v47 }
  0xcd   : > { %1308 = vmatprep.subr.bf16.mxu0 %v1454_v49 }
  0xd0   : > { %1309 = vmatpush3.bf16.msra.mxu0 %v1455_v50 }
  0xd1   : > { %1310 = vmatprep.subr.bf16.mxu0 %v1456_v51 }
  0xd4   : > { %1311 = vmatpush3.bf16.msra.mxu0 %v1457_v52 }
  0xd7   : > { %975 = vmatmul.mubr.bf16.vlgmr.msra.gmra.mxu0 %v1458_v53 }
 0x177   : > { %v1268_v54 = vpop.f32.mrf.mxu0 }
 0x179   : > { %v1269_v56 = vpop.f32.mrf.mxu0 }
 0x17a   : > { %v1270_v14 = vadd.f32 %v1269_v56, %v1268_v54 }
 0x17b   : > { %v1290_v55 = vpop.f32.mrf.mxu1  ;;  %v1271_v58 = vpop.f32.mrf.mxu0 }
 0x17c   : > { %v608_v22 = vadd.f32 %v1270_v14, %v1190_v16 }
 0x17d   : > { %v1291_v57 = vpop.f32.mrf.mxu1  ;;  %v1272_v60 = vpop.f32.mrf.mxu0 }
 0x17e   : > { %v1292_v61 = vadd.f32 %v1291_v57, %v1290_v55  ;;  %v1273_v24 = vadd.f32 %v1272_v60, %v1271_v58 }
 0x17f   : > { %v1293_v59 = vpop.f32.mrf.mxu1 }
 0x180   : > { %v936_v2 = vadd.f32 %v1292_v61, %v1209_v62  ;;  %v611_v31 = vadd.f32 %v1273_v24, %v1190_v16 }
 0x181   : > { %v1294_v0 = vpop.f32.mrf.mxu1 }
 0x182   : > { %v1295_v4 = vadd.f32 %v1294_v0, %v1293_v59 }
 0x184   : > { %v939_v10 = vadd.f32 %v1295_v4, %v1209_v62 }
 0x197   : > { %v1312_v63 = vpop.f32.mrf.mxu0 }
 0x199   : > { %v1313_v1 = vpop.f32.mrf.mxu0 }
 0x19a   : > { %v1314_v3 = vadd.f32 %v1313_v1, %v1312_v63 }
 0x19b   : > { %v1315_v5 = vpop.f32.mrf.mxu0 }
 0x19c   : > { %v977_v6 = vadd.f32 %v1314_v3, %v936_v2 }
 0x19d   : > { %v1316_v7 = vpop.f32.mrf.mxu0 }
 0x19e   : > { %v983_v8 = vmax.f32 %v977_v6, 0.0  ;;  %v1317_v9 = vadd.f32 %v1316_v7, %v1315_v5 }
 0x1a0   : > { %1461 = vrsqrt.f32 %v983_v8  ;;  %v980_v11 = vadd.f32 %v1317_v9, %v939_v10  ;;  %vm987_vm0 = vcmp.eq.f32.partialorder %v983_v8, inf  ;;  %v990_v17 = vand.u32 2147483648, %v983_v8 }
 0x1a1   : > { %vm989_vm1 = vcmp.eq.f32.partialorder %v983_v8, 0.0 }
 0x1a2   : > { %v984_v12 = vmax.f32 %v980_v11, 0.0 }
 0x1a4   : > { %1463 = vrsqrt.f32 %v984_v12  ;;  %vm994_vm2 = vcmp.eq.f32.partialorder %v984_v12, inf  ;;  %v997_v26 = vand.u32 2147483648, %v984_v12  ;;  %vm996_vm3 = vcmp.eq.f32.partialorder %v984_v12, 0.0 }
 0x1ad   : > { %v1462_v13 = vpop.eup %1461 }
 0x1ae   : > { %v986_v15 = vmul.f32 %v1462_v13, %v983_v8 }
 0x1b0   : > { %v988_v19 = vsel %vm987_vm0, %v983_v8, %v986_v15 }
 0x1b1   : > { %v991_v20 = vsel %vm989_vm1, %v990_v17, %v988_v19  ;;  %v1464_v21 = vpop.eup %1463 }
 0x1b2   : > { %v1001_v23 = vmul.f32 %v999_v18, %v991_v20  ;;  %v993_v25 = vmul.f32 %v1464_v21, %v984_v12 }
 0x1b4   : > { %v1003_v28 = vadd.f32 %v1001_v23, %v608_v22  ;;  %v995_v29 = vsel %vm994_vm2, %v984_v12, %v993_v25 }
 0x1b5   : > { %v998_v30 = vsel %vm996_vm3, %v997_v26, %v995_v29 }
 0x1b6   : > { %1005 = vst [vmem:[%s418_s11] sm:$0xff] %v1003_v28  ;;  %v1002_v32 = vmul.f32 %v1000_v27, %v998_v30 }
 0x1b8   : > { %v1004_v33 = vadd.f32 %v1002_v32, %v611_v31 }
 0x1ba   : > { %1006 = vst [vmem:[%s418_s11 + $0x8] sm:$0xff] %v1004_v33 }
 0x1bb   : > { %1614 = shalt.err (!%p1611_p6)
}
 0x1bc   : > { %s1615_s26 = scalar_lea.hbm %s2021_s15, 256  ;;  %s1619_s21 = scalar_lea.hbm %s2073_s7, 512 }
 0x1bd   : > { %p1616_p13 = scmp.ne.s32.totalorder %s2021_s15, %s1615_s26  ;;  %p1620_p7 = scmp.lt.s32.totalorder %s2021_s15, %s2073_s7 }
 0x1be   : > { %p1621_p11 = scmp.lt.s32.totalorder %s1619_s21, %s1615_s26 }
 0x1bf   : > { %p1617_p2 = pnand %p1616_p13, %p2116_p9 }
 0x1c0   : > { %p1622_p3 = por %p1621_p11, %p1620_p7 }
 0x1c1   : > { %p1618_p0 = pneg %p1617_p2 }
 0x1c3   : > { %p1623_p8 = pnand %p1622_p3, %p1618_p0 }
 0x1c5   : > { %1626 = shalt.err (!%p1623_p8)
}
 0x1c6   : > { %s1687_s16 = smov 128   ;;  %s1688_s19 = smov 256  }
 0x1c7   : > { %s1689_s20 = smov 8  }
 0x1c8   : > { %1332 = dma.vmem_to_hbm [thread:$0]  (%p2116_p9), %s2023_s30, 256, %s2021_s15, %s1008_s28, %s1687_s16, %s1688_s19, %s1689_s20  }
 0x1c9 PF: > { %s2117_s23 = sld [smem:[#allocation18_spill]]  ;;  %s1035_s11 = sand.u32 1, %s1661_s24  }
 0x1ca   : > { %p2119_p1 = scmp.ge.s32.totalorder %s1673_s27, 2  ;;  %s1036_s2 = scalar_lea.sflag [#allocation4], %s1035_s11 }
 0x1cf   : > { %p2118_p10 = scmp.ne.s32.totalorder %s2117_s23, 0 }
 0x1d1   : > { %p1352_p5 = pnand %p2119_p1, %p2118_p10 }
 0x1d3   : > { %p1353_p12 = pneg %p1352_p5 }
 0x1d5   : > { %1656 = dma.done.wait (%p1353_p12), %s1036_s2, 256  }
 0x1d6   : > { %1658 = vsyncadd (%p1353_p12), %s1036_s2, 4294967040  ;;  %s2120_s27 = sld [smem:[#allocation16_spill]]  ;;  %s2123_s24 = smov %s1665_s25 }
 0x1d7   : > { %s2121_s22 = sld [smem:[#allocation15_spill]] }
 0x1d8   : > { %s2122_s26 = sld [smem:[#allocation17_spill]] }
 0x1dc   : > { %p19_p4 = scmp.ge.s32.totalorder %s2120_s27, 4  }
 0x1dd   : > { %s2124_s25 = smov %s2121_s22 }
 0x1de   :  { %21 = sbr.rel (!%p19_p4) target bundleno = 8 (0x8), region = 128 }
 0x1e3   :  { %1041 = vsyncpa [#allocation3], 1 }
 0x1e4   :  { %1043 = vsyncpa [#allocation3 + $0x1], 1 }
 0x1e5   :  { %1044 = vsyncpa [#allocation6], 1 }
 0x1e6   :  { %1045 = vsyncpa [#allocation4], 1 }
 0x1e7   :  { %1047 = vsyncpa [#allocation4 + $0x1], 1 }

</bundles_post_ra>
